<compile_context>
chip_gen: v7x
topology: tpu7x:2x2x1
jax: 0.10.0
libtpu: 0.0.40
codegen_flags: <defaults>
</compile_context>

<pallas_src>
import functools

import jax
import jax.numpy as jnp
from jax.experimental import pallas as pl
from jax.experimental.pallas import tpu as pltpu


def siamese_kernel(ids_ref, emb_ref, wt_ref, b_ref, out_ref, *, S, B, L):
    # ids_ref: [S*B*L, 1] int32 token ids (anchor rows, then positive, then negative)
    # emb_ref: [Vp, Hp]   f32 zero-padded embedding table
    # wt_ref : [Hp, Hp]   f32 zero-padded W^T of the Linear layer
    # b_ref  : [1, Hp]    f32 zero-padded bias
    # out_ref: [1, 1]     f32 triplet loss
    N = S * B * L
    Vp = emb_ref.shape[0]
    Hp = emb_ref.shape[1]

    # --- embedding gather as a one-hot matmul on the MXU (exact with HIGHEST) ---
    lane_iota = jax.lax.broadcasted_iota(jnp.int32, (N, Vp), 1)
    onehot = (ids_ref[...] == lane_iota).astype(jnp.float32)            # [N, Vp]
    x = jnp.dot(onehot, emb_ref[...],
                preferred_element_type=jnp.float32,
                precision=jax.lax.Precision.HIGHEST)                    # [N, Hp]

    # --- Linear(H, H): y = x @ W^T + b (padded cols of wt/b are exactly zero) ---
    y = jnp.dot(x, wt_ref[...],
                preferred_element_type=jnp.float32,
                precision=jax.lax.Precision.HIGHEST) + b_ref[...]       # [N, Hp]

    # --- max-pool over the sequence dim (lane dim untouched; rows group by L) ---
    v = jnp.max(y.reshape(S * B, L, Hp), axis=1)                        # [S*B, Hp]
    a = v[0 * B:1 * B]                                                  # anchor   [B, Hp]
    p = v[1 * B:2 * B]                                                  # positive [B, Hp]
    n = v[2 * B:3 * B]                                                  # negative [B, Hp]

    # --- cosine triplet loss (padded lanes are exactly zero -> no effect on sums) ---
    def l2_normalize(t):
        ss = jnp.sum(t * t, axis=-1, keepdims=True)
        # matches F.normalize(eps=1e-12): divide by max(||t||, 1e-12)
        return t * jax.lax.rsqrt(jnp.maximum(ss, 1e-24))

    a = l2_normalize(a)
    p = l2_normalize(p)
    n = l2_normalize(n)

    cos_ap = jnp.sum(a * p, axis=-1, keepdims=True)                     # [B, 1]
    cos_an = jnp.sum(a * n, axis=-1, keepdims=True)                     # [B, 1]
    # diff = (1 - cos_ap) - (1 - cos_an) + 0.1
    diff = cos_an - cos_ap + 0.1
    mask = diff > 0.0
    total = jnp.sum(jnp.where(mask, diff, 0.0), keepdims=True)          # [1, 1]
    count = jnp.sum(mask.astype(jnp.float32), keepdims=True)            # [1, 1]
    # Exact divide on a [1,1] value: matches torch.mean; 0/0 -> NaN like an
    # empty-tensor mean (intentional).
    out_ref[...] = total / count


def _round_up(x, m):
    return ((x + m - 1) // m) * m


def siamese_triplet_loss(params, sentence1, sentence2, sentence3):
    emb = params["embedding"]   # [V+1, H], row 0 is the padding vector (zeros)
    w = params["linear_w"]      # [H, H]  (out_features, in_features) as in nn.Linear
    b = params["linear_b"]      # [H]

    Vtab, H = emb.shape
    B, L = sentence1.shape
    S = 3
    LANE = 128
    Hp = _round_up(H, LANE)
    Vp = _round_up(Vtab, LANE)

    # Lane-dense zero padding + transpose done in the wrapper (free layout plumbing).
    emb_pad = jnp.zeros((Vp, Hp), jnp.float32).at[:Vtab, :H].set(emb.astype(jnp.float32))
    wt_pad = jnp.zeros((Hp, Hp), jnp.float32).at[:H, :H].set(w.T.astype(jnp.float32))
    b_pad = jnp.zeros((1, Hp), jnp.float32).at[0, :H].set(b.astype(jnp.float32))

    tokens = jnp.stack([sentence1, sentence2, sentence3], axis=0).astype(jnp.int32)  # [3, B, L]
    ids = tokens.reshape(S * B * L, 1)                                               # [N, 1]

    kernel = functools.partial(siamese_kernel, S=S, B=B, L=L)

    loss = pl.pallas_call(
        kernel,
        out_shape=jax.ShapeDtypeStruct((1, 1), jnp.float32),
        in_specs=[pl.BlockSpec(memory_space=pltpu.MemorySpace.VMEM)] * 4,
        out_specs=pl.BlockSpec(memory_space=pltpu.MemorySpace.VMEM),
    )(ids, emb_pad, wt_pad, b_pad)
    return loss[0, 0]


def init_params(key, vocab_size, hidden_size):
    k_emb, k_w, k_b = jax.random.split(key, 3)
    # nn.Embedding(vocab_size + 1, hidden); padding_idx=0 -> row 0 zeroed
    emb = jax.random.normal(k_emb, (vocab_size + 1, hidden_size), jnp.float32) * 0.1
    emb = emb.at[0].set(0.0)
    # nn.Linear(hidden, hidden)
    bound = 1.0 / jnp.sqrt(hidden_size)
    w = jax.random.uniform(k_w, (hidden_size, hidden_size), jnp.float32, -bound, bound)
    b = jax.random.uniform(k_b, (hidden_size,), jnp.float32, -bound, bound)
    return {"embedding": emb, "linear_w": w, "linear_b": b}


if __name__ == "__main__":
    # config: {"hidden_size": 32, "vocab_size": 30, "max_length": 8}
    hidden_size = 32
    vocab_size = 30
    max_length = 8
    batch = 2

    key = jax.random.PRNGKey(0)
    k_params, k1, k2, k3 = jax.random.split(key, 4)
    params = init_params(k_params, vocab_size, hidden_size)

    # token ids in [0, vocab_size]; 0 acts as padding index
    s1 = jax.random.randint(k1, (batch, max_length), 0, vocab_size + 1, jnp.int32)
    s2 = jax.random.randint(k2, (batch, max_length), 0, vocab_size + 1, jnp.int32)
    s3 = jax.random.randint(k3, (batch, max_length), 0, vocab_size + 1, jnp.int32)

    loss = jax.jit(siamese_triplet_loss)(params, s1, s2, s3)
    jax.block_until_ready(loss)
    print("KERNEL_OK")
</pallas_src>

<mosaic_0001>
module attributes {stable_mosaic.version = 11 : i64} {
  func.func @siamese_kernel(%arg0: memref<48x1xi32, #tpu.memory_space<vmem>>, %arg1: memref<128x128xf32, #tpu.memory_space<vmem>>, %arg2: memref<128x128xf32, #tpu.memory_space<vmem>>, %arg3: memref<1x128xf32, #tpu.memory_space<vmem>>, %arg4: memref<1x1xf32, #tpu.memory_space<vmem>>) attributes {dimension_semantics = [], scalar_prefetch = 0 : i64, scratch_operands = 0 : i64, tpu.core_type = #tpu.core_type<tc>} {
    %0 = tpu.iota {dimensions = array<i32: 1>} : vector<48x128xi32>
    %c0 = arith.constant 0 : index
    %c0_0 = arith.constant 0 : index
    %1 = vector.load %arg0[%c0, %c0_0] : memref<48x1xi32, #tpu.memory_space<vmem>>, vector<48x1xi32>
    %2 = vector.broadcast %1 : vector<48x1xi32> to vector<48x128xi32>
    %3 = arith.cmpi eq, %2, %0 : vector<48x128xi32>
    %4 = arith.extui %3 : vector<48x128xi1> to vector<48x128xi32>
    %5 = arith.sitofp %4 : vector<48x128xi32> to vector<48x128xf32>
    %c0_1 = arith.constant 0 : index
    %c0_2 = arith.constant 0 : index
    %6 = vector.load %arg1[%c0_1, %c0_2] : memref<128x128xf32, #tpu.memory_space<vmem>>, vector<128x128xf32>
    %cst = arith.constant dense<0.000000e+00> : vector<48x128xf32>
    %7 = tpu.matmul %5, %6, %cst {dimension_numbers = #tpu.dot_dimension_numbers<[1], [0], [0], [1], [0, 0, 1, 1], [], []>, precision = #tpu.contract_precision<fp32>} : vector<48x128xf32>, vector<128x128xf32>, vector<48x128xf32> -> vector<48x128xf32>
    %c0_3 = arith.constant 0 : index
    %c0_4 = arith.constant 0 : index
    %8 = vector.load %arg2[%c0_3, %c0_4] : memref<128x128xf32, #tpu.memory_space<vmem>>, vector<128x128xf32>
    %cst_5 = arith.constant dense<0.000000e+00> : vector<48x128xf32>
    %9 = tpu.matmul %7, %8, %cst_5 {dimension_numbers = #tpu.dot_dimension_numbers<[1], [0], [0], [1], [0, 0, 1, 1], [], []>, precision = #tpu.contract_precision<fp32>} : vector<48x128xf32>, vector<128x128xf32>, vector<48x128xf32> -> vector<48x128xf32>
    %c0_6 = arith.constant 0 : index
    %c0_7 = arith.constant 0 : index
    %10 = vector.load %arg3[%c0_6, %c0_7] : memref<1x128xf32, #tpu.memory_space<vmem>>, vector<1x128xf32>
    %11 = vector.broadcast %10 : vector<1x128xf32> to vector<48x128xf32>
    %12 = arith.addf %9, %11 : vector<48x128xf32>
    %13 = vector.shape_cast %12 : vector<48x128xf32> to vector<6x8x128xf32>
    %cst_8 = arith.constant dense<0xFF800000> : vector<6x128xf32>
    %14 = vector.multi_reduction <maximumf>, %13, %cst_8 [1] : vector<6x8x128xf32> to vector<6x128xf32>
    %15 = vector.extract_strided_slice %14 {offsets = [0, 0], sizes = [2, 128], strides = [1, 1]} : vector<6x128xf32> to vector<2x128xf32>
    %16 = vector.extract_strided_slice %14 {offsets = [2, 0], sizes = [2, 128], strides = [1, 1]} : vector<6x128xf32> to vector<2x128xf32>
    %17 = vector.extract_strided_slice %14 {offsets = [4, 0], sizes = [2, 128], strides = [1, 1]} : vector<6x128xf32> to vector<2x128xf32>
    %18 = arith.mulf %15, %15 : vector<2x128xf32>
    %cst_9 = arith.constant dense<0.000000e+00> : vector<2xf32>
    %19 = vector.multi_reduction <add>, %18, %cst_9 [1] : vector<2x128xf32> to vector<2xf32>
    %20 = vector.shape_cast %19 : vector<2xf32> to vector<2x1xf32>
    %cst_10 = arith.constant 1.000000e-24 : f32
    %21 = vector.broadcast %cst_10 : f32 to vector<2x1xf32>
    %22 = arith.maximumf %20, %21 : vector<2x1xf32>
    %23 = math.rsqrt %22 : vector<2x1xf32>
    %24 = vector.broadcast %23 : vector<2x1xf32> to vector<2x128xf32>
    %25 = arith.mulf %15, %24 : vector<2x128xf32>
    %26 = arith.mulf %16, %16 : vector<2x128xf32>
    %cst_11 = arith.constant dense<0.000000e+00> : vector<2xf32>
    %27 = vector.multi_reduction <add>, %26, %cst_11 [1] : vector<2x128xf32> to vector<2xf32>
    %28 = vector.shape_cast %27 : vector<2xf32> to vector<2x1xf32>
    %cst_12 = arith.constant 1.000000e-24 : f32
    %29 = vector.broadcast %cst_12 : f32 to vector<2x1xf32>
    %30 = arith.maximumf %28, %29 : vector<2x1xf32>
    %31 = math.rsqrt %30 : vector<2x1xf32>
    %32 = vector.broadcast %31 : vector<2x1xf32> to vector<2x128xf32>
    %33 = arith.mulf %16, %32 : vector<2x128xf32>
    %34 = arith.mulf %17, %17 : vector<2x128xf32>
    %cst_13 = arith.constant dense<0.000000e+00> : vector<2xf32>
    %35 = vector.multi_reduction <add>, %34, %cst_13 [1] : vector<2x128xf32> to vector<2xf32>
    %36 = vector.shape_cast %35 : vector<2xf32> to vector<2x1xf32>
    %cst_14 = arith.constant 1.000000e-24 : f32
    %37 = vector.broadcast %cst_14 : f32 to vector<2x1xf32>
    %38 = arith.maximumf %36, %37 : vector<2x1xf32>
    %39 = math.rsqrt %38 : vector<2x1xf32>
    %40 = vector.broadcast %39 : vector<2x1xf32> to vector<2x128xf32>
    %41 = arith.mulf %17, %40 : vector<2x128xf32>
    %42 = arith.mulf %25, %33 : vector<2x128xf32>
    %cst_15 = arith.constant dense<0.000000e+00> : vector<2xf32>
    %43 = vector.multi_reduction <add>, %42, %cst_15 [1] : vector<2x128xf32> to vector<2xf32>
    %44 = vector.shape_cast %43 : vector<2xf32> to vector<2x1xf32>
    %45 = arith.mulf %25, %41 : vector<2x128xf32>
    %cst_16 = arith.constant dense<0.000000e+00> : vector<2xf32>
    %46 = vector.multi_reduction <add>, %45, %cst_16 [1] : vector<2x128xf32> to vector<2xf32>
    %47 = vector.shape_cast %46 : vector<2xf32> to vector<2x1xf32>
    %48 = arith.subf %47, %44 : vector<2x1xf32>
    %cst_17 = arith.constant 1.000000e-01 : f32
    %49 = vector.broadcast %cst_17 : f32 to vector<2x1xf32>
    %50 = arith.addf %48, %49 : vector<2x1xf32>
    %cst_18 = arith.constant 0.000000e+00 : f32
    %51 = vector.broadcast %cst_18 : f32 to vector<2x1xf32>
    %52 = arith.cmpf ogt, %50, %51 : vector<2x1xf32>
    %cst_19 = arith.constant 0.000000e+00 : f32
    %53 = vector.broadcast %cst_19 : f32 to vector<2x1xf32>
    %54 = arith.select %52, %50, %53 : vector<2x1xi1>, vector<2x1xf32>
    %55 = vector.shape_cast %54 : vector<2x1xf32> to vector<1x2x1xf32>
    %cst_20 = arith.constant dense<0.000000e+00> : vector<1xf32>
    %56 = vector.multi_reduction <add>, %55, %cst_20 [1, 2] : vector<1x2x1xf32> to vector<1xf32>
    %57 = vector.shape_cast %56 : vector<1xf32> to vector<1x1x1xf32>
    %58 = vector.extract %57[0, 0, 0] : f32 from vector<1x1x1xf32>
    %59 = vector.broadcast %58 : f32 to vector<1x1xf32>
    %60 = arith.extui %52 : vector<2x1xi1> to vector<2x1xi32>
    %61 = arith.sitofp %60 : vector<2x1xi32> to vector<2x1xf32>
    %62 = vector.shape_cast %61 : vector<2x1xf32> to vector<1x2x1xf32>
    %cst_21 = arith.constant dense<0.000000e+00> : vector<1xf32>
    %63 = vector.multi_reduction <add>, %62, %cst_21 [1, 2] : vector<1x2x1xf32> to vector<1xf32>
    %64 = vector.shape_cast %63 : vector<1xf32> to vector<1x1x1xf32>
    %65 = vector.extract %64[0, 0, 0] : f32 from vector<1x1x1xf32>
    %66 = vector.broadcast %65 : f32 to vector<1x1xf32>
    %67 = arith.divf %59, %66 : vector<1x1xf32>
    %c0_22 = arith.constant 0 : index
    %c0_23 = arith.constant 0 : index
    %68 = vector.load %arg4[%c0_22, %c0_23] : memref<1x1xf32, #tpu.memory_space<vmem>>, vector<1x1xf32>
    tpu.vector_store %arg4[%c0_22, %c0_23], %67 {strides = array<i32>} : memref<1x1xf32, #tpu.memory_space<vmem>>, vector<1x1xf32>,
    return
  }
}

</mosaic_0001>

<bundles_post_ra>
// kernel: siamese_triplet_loss.1
= control target key start
LH: loop header
LB: loop body
LE: loop exit
PB: predicated region body
PF: predicated region fallthrough
CT: control target
= control target key end

     0   :  { %v3243_v2 = vmov 0   ;;  %s4270_s0 = inlined_call_operand.vmem [shape: s32[48,1], index: 0, kind: input, shape index: {}]   ;;  %s4271_s1 = inlined_call_operand.vmem [shape: f32[128,128], index: 1, kind: input, shape index: {}]   ;;  %s4272_s2 = inlined_call_operand.vmem [shape: f32[128,128], index: 2, kind: input, shape index: {}]   ;;  %s4273_s3 = inlined_call_operand.vmem [shape: f32[1,128], index: 3, kind: input, shape index: {}]   ;;  %s4274_s4 = inlined_call_operand.hbm [shape: f32[1,1], index: 4, kind: output, shape index: {}]  }
   0x1   :  { %v20_v0 = vld [vmem:[%s4270_s0] sm:$0xff]  ;;  %v22_v1 = vld [vmem:[%s4270_s0 + $0x10] sm:$0xff]  ;;  %3209 = vset.pattern.permute.xlu0 %v3243_v2  ;;  %3210 = vset.pattern.permute.xlu1 %v3243_v2  ;;  %v21_v3 = vld [vmem:[%s4270_s0 + $0x8] sm:$0xff] }
   0x2   :  { %v23_v4 = vld [vmem:[%s4270_s0 + $0x18] sm:$0xff]  ;;  %27 = vperm.xlu0 %3209, %v20_v0   ;;  %33 = vperm.xlu1 %3210, %v22_v1   ;;  %v62_v5 = vld [vmem:[%s4271_s1] sm:$0xff]  ;;  %v63_v6 = vld [vmem:[%s4271_s1 + $0x8] sm:$0xff] }
   0x3   :  { %v64_v7 = vld [vmem:[%s4271_s1 + $0x10] sm:$0xff]  ;;  %v79_v8 = vand.u32 4294901760, %v62_v5  ;;  %v82_v9 = vand.u32 4294901760, %v63_v6  ;;  %v65_v10 = vld [vmem:[%s4271_s1 + $0x18] sm:$0xff]  ;;  %v66_v12 = vld [vmem:[%s4271_s1 + $0x20] sm:$0xff] }
   0x4   :  { %v85_v11 = vand.u32 4294901760, %v64_v7  ;;  %v67_v13 = vld [vmem:[%s4271_s1 + $0x28] sm:$0xff]  ;;  %v88_v14 = vand.u32 4294901760, %v65_v10  ;;  %v91_v16 = vand.u32 4294901760, %v66_v12  ;;  %v68_v19 = vld [vmem:[%s4271_s1 + $0x30] sm:$0xff]  ;;  %v69_v20 = vld [vmem:[%s4271_s1 + $0x38] sm:$0xff] }
   0x5   :  { %v3302_v15 = vpack.c.bf16 %v82_v9, %v79_v8  ;;  %v94_v17 = vand.u32 4294901760, %v67_v13  ;;  %v24_v21 = vld [vmem:[%s4270_s0 + $0x20] sm:$0xff]  ;;  %v25_v22 = vld [vmem:[%s4270_s0 + $0x28] sm:$0xff] }
   0x6   :  { %30 = vperm.xlu0 %3209, %v21_v3   ;;  %36 = vperm.xlu1 %3210, %v23_v4   ;;  %v3304_v18 = vpack.c.bf16 %v88_v14, %v85_v11 }
   0x7   :  { %2752 = vmatprep.subr.bf16.mxu0 %v3302_v15 }
   0x8   :  { %9 = vsyncpa [#allocation3], 0  ;;  %2754 = vmatpush3.bf16.msra.mxu0 %v3302_v15  ;;  %v3321_v23 = vpack.c.bf16 %v94_v17, %v91_v16  ;;  %v97_v24 = vand.u32 4294901760, %v68_v19  ;;  %v100_v25 = vand.u32 4294901760, %v69_v20  ;;  %v70_v26 = vld [vmem:[%s4271_s1 + $0x40] sm:$0xff]  ;;  %v71_v27 = vld [vmem:[%s4271_s1 + $0x48] sm:$0xff]  ;;  %v3329_v28 = vsub.f32 %v64_v7, %v85_v11 }
   0x9   :  { %2756 = vmatprep.subr.bf16.mxu0 %v3304_v18  ;;  %v3331_v29 = vsub.f32 %v65_v10, %v88_v14  ;;  %v72_v30 = vld [vmem:[%s4271_s1 + $0x50] sm:$0xff]  ;;  %v103_v34 = vand.u32 4294901760, %v70_v26  ;;  %v106_v35 = vand.u32 4294901760, %v71_v27  ;;  %v73_v36 = vld [vmem:[%s4271_s1 + $0x58] sm:$0xff]  ;;  %v3351_v39 = vsub.f32 %v66_v12, %v91_v16  ;;  %v74_v43 = vld [vmem:[%s4271_s1 + $0x60] sm:$0xff]  ;;  %s3246_s11 = smov [#allocation2]  }
   0xa   :  { %39 = vperm.xlu0 %3209, %v24_v21   ;;  %42 = vperm.xlu1 %3210, %v25_v22   ;;  %v4289_v31 = vand.u32 4294901760, %v3329_v28  ;;  %v3340_v33 = vpack.c.bf16 %v100_v25, %v97_v24  ;;  %v109_v40 = vand.u32 4294901760, %v72_v30  ;;  %v3353_v41 = vsub.f32 %v67_v13, %v94_v17  ;;  %v75_v48 = vld [vmem:[%s4271_s1 + $0x68] sm:$0xff]  ;;  %v76_v59 = vld [vmem:[%s4271_s1 + $0x70] sm:$0xff]  ;;  %v77_v3 = vld [vmem:[%s4271_s1 + $0x78] sm:$0xff]  ;;  %s1961_s12 = sshll.u32 %s3246_s11, 4  ;;  %s1962_s12 = int_to_ptr.vmem [resolvable:$true] %s1961_s12 }
   0xb   :  { %v4288_v32 = vand.u32 4294901760, %v3331_v29  ;;  %v112_v42 = vand.u32 4294901760, %v73_v36  ;;  %v4286_v46 = vand.u32 4294901760, %v3351_v39  ;;  %v3361_v47 = vpack.c.bf16 %v106_v35, %v103_v34  ;;  %s3219_s13 = scalar_lea.vmem %s1962_s12, 16  ;;  %s3223_s14 = scalar_lea.vmem %s1962_s12, 32 }
   0xc   :  { %2758 = vmatpush3.bf16.msra.mxu0 %v3304_v18  ;;  %v237_v37 = vsub.f32 %v3329_v28, %v4289_v31  ;;  %v3366_v49 = vsub.f32 %v62_v5, %v79_v8  ;;  %v3368_v50 = vsub.f32 %v63_v6, %v82_v9  ;;  %v4285_v51 = vand.u32 4294901760, %v3353_v41  ;;  %p3220_p0 = scmp.ne.s32.totalorder %s1962_s12, %s3219_s13  ;;  %p3224_p1 = scmp.lt.s32.totalorder %s1962_s12, %s1962_s12 }
   0xd   :  { %2760 = vmatprep.subr.bf16.mxu0 %v3321_v23  ;;  %v244_v38 = vsub.f32 %v3331_v29, %v4288_v32  ;;  %v251_v53 = vsub.f32 %v3351_v39, %v4286_v46  ;;  %v3376_v54 = vsub.f32 %v68_v19, %v97_v24  ;;  %v3378_v55 = vsub.f32 %v69_v20, %v100_v25  ;;  %p3225_p2 = scmp.lt.s32.totalorder %s3223_s14, %s3219_s13 }
   0xe   :  { %v238_v44 = vand.u32 4294901760, %v237_v37  ;;  %v115_v56 = vand.u32 4294901760, %v74_v43  ;;  %v258_v57 = vsub.f32 %v3353_v41, %v4285_v51  ;;  %v118_v58 = vand.u32 4294901760, %v75_v48 }
   0xf   :  { %v245_v45 = vand.u32 4294901760, %v244_v38  ;;  %v252_v60 = vand.u32 4294901760, %v251_v53  ;;  %v4284_v61 = vand.u32 4294901760, %v3376_v54  ;;  %v4283_v62 = vand.u32 4294901760, %v3378_v55  ;;  %p3226_p3 = por %p3225_p2, %p3224_p1 }
  0x10   :  { %2762 = vmatpush3.bf16.msra.mxu0 %v3321_v23  ;;  %v3390_v63 = vpack.c.bf16 %v112_v42, %v109_v40  ;;  %v4291_v0 = vand.u32 4294901760, %v3366_v49  ;;  %v4290_v1 = vand.u32 4294901760, %v3368_v50  ;;  %v259_v2 = vand.u32 4294901760, %v258_v57 }
  0x11   :  { %2764 = vmatprep.subr.bf16.mxu0 %v3340_v33  ;;  %v3371_v52 = vpack.c.bf16 %v245_v45, %v238_v44  ;;  %v265_v4 = vsub.f32 %v3376_v54, %v4284_v61  ;;  %v272_v5 = vsub.f32 %v3378_v55, %v4283_v62  ;;  %v3403_v6 = vsub.f32 %v70_v26, %v103_v34  ;;  %p3227_p4 = pnand %p3226_p3, %p3220_p0 }
  0x12   :  { %v3405_v7 = vsub.f32 %v71_v27, %v106_v35  ;;  %v121_v8 = vand.u32 4294901760, %v76_v59  ;;  %v3407_v9 = vpack.c.bf16 %v259_v2, %v252_v60  ;;  %v3413_v14 = vpack.c.bf16 %v118_v58, %v115_v56 }
  0x13   :  { %v266_v10 = vand.u32 4294901760, %v265_v4  ;;  %v273_v11 = vand.u32 4294901760, %v272_v5  ;;  %v4282_v12 = vand.u32 4294901760, %v3403_v6  ;;  %v124_v16 = vand.u32 4294901760, %v77_v3 }
  0x14   :  { %2766 = vmatpush3.bf16.msra.mxu0 %v3340_v33  ;;  %v4281_v13 = vand.u32 4294901760, %v3405_v7  ;;  %v223_v17 = vsub.f32 %v3366_v49, %v4291_v0  ;;  %v230_v19 = vsub.f32 %v3368_v50, %v4290_v1  ;;  %v3429_v24 = vsub.f32 %v72_v30, %v109_v40 }
  0x15   :  { %2768 = vmatprep.subr.bf16.mxu0 %v3361_v47  ;;  %v3421_v20 = vpack.c.bf16 %v273_v11, %v266_v10  ;;  %v279_v21 = vsub.f32 %v3403_v6, %v4282_v12  ;;  %v3431_v25 = vsub.f32 %v73_v36, %v112_v42  ;;  %v3436_v35 = vpack.c.bf16 %v124_v16, %v121_v8 }
  0x16   :  { %v286_v22 = vsub.f32 %v3405_v7, %v4281_v13  ;;  %v4280_v34 = vand.u32 4294901760, %v3429_v24  ;;  %v224_v37 = vand.u32 4294901760, %v223_v17  ;;  %v231_v38 = vand.u32 4294901760, %v230_v19 }
  0x17   :  { %v280_v26 = vand.u32 4294901760, %v279_v21  ;;  %v4279_v44 = vand.u32 4294901760, %v3431_v25  ;;  %v3444_v36 = vsub.f32 %v74_v43, %v115_v56  ;;  %v3446_v40 = vsub.f32 %v75_v48, %v118_v58 }
  0x18   :  { %2770 = vmatpush3.bf16.msra.mxu0 %v3361_v47  ;;  %v287_v27 = vand.u32 4294901760, %v286_v22  ;;  %v293_v30 = vsub.f32 %v3429_v24, %v4280_v34  ;;  %v3455_v2 = vpack.c.bf16 %v231_v38, %v224_v37  ;;  %v3463_v56 = vsub.f32 %v76_v59, %v121_v8 }
  0x19   :  { %2772 = vmatprep.subr.bf16.mxu0 %v3390_v63  ;;  %v300_v42 = vsub.f32 %v3431_v25, %v4279_v44  ;;  %v4278_v57 = vand.u32 4294901760, %v3444_v36  ;;  %v4277_v60 = vand.u32 4294901760, %v3446_v40  ;;  %v3465_v58 = vsub.f32 %v77_v3, %v124_v16 }
  0x1a   :  { %v3439_v45 = vpack.c.bf16 %v287_v27, %v280_v26  ;;  %v294_v53 = vand.u32 4294901760, %v293_v30  ;;  %v4276_v17 = vand.u32 4294901760, %v3463_v56  ;;  %v3485_v26 = vpack.c.bf16 %v3368_v50, %v3366_v49 }
  0x1b   :  { %v301_v4 = vand.u32 4294901760, %v300_v42  ;;  %v307_v43 = vsub.f32 %v3444_v36, %v4278_v57  ;;  %v314_v48 = vsub.f32 %v3446_v40, %v4277_v60  ;;  %4320 = vst [vmem:[#allocation5_spill] sm:$0xff] %v3465_v58  ;;  %v4275_v19 = vand.u32 4294901760, %v3465_v58 }
  0x1c   :  { %2774 = vmatpush3.bf16.msra.mxu0 %v3390_v63  ;;  %v321_v59 = vsub.f32 %v3463_v56, %v4276_v17  ;;  %v3489_v27 = vpack.c.bf16 %v3331_v29, %v3329_v28  ;;  %v3493_v37 = vpack.c.bf16 %v3353_v41, %v3351_v39  ;;  %v3497_v38 = vpack.c.bf16 %v3378_v55, %v3376_v54 }
  0x1d   :  { %2776 = vmatprep.subr.bf16.mxu0 %v3413_v14  ;;  %v3467_v5 = vpack.c.bf16 %v301_v4, %v294_v53  ;;  %v308_v10 = vand.u32 4294901760, %v307_v43  ;;  %v315_v11 = vand.u32 4294901760, %v314_v48  ;;  %v328_v3 = vsub.f32 %v3465_v58, %v4275_v19 }
  0x1e   :  { %v322_v8 = vand.u32 4294901760, %v321_v59  ;;  %v3501_v30 = vpack.c.bf16 %v3405_v7, %v3403_v6  ;;  %v3505_v42 = vpack.c.bf16 %v3431_v25, %v3429_v24  ;;  %v3509_v53 = vpack.c.bf16 %v3446_v40, %v3444_v36 }
  0x1f   :  { %v3473_v21 = vpack.c.bf16 %v315_v11, %v308_v10  ;;  %v329_v16 = vand.u32 4294901760, %v328_v3  ;;  %v3513_v4 = vpack.c.bf16 %v3465_v58, %v3463_v56  ;;  %v18_v43 = vlaneseq }
  0x20   :  { %2778 = vmatpush3.bf16.msra.mxu0 %v3413_v14  ;;  %v4294_v59 = vmov 0.0   ;;  %vm1853_vm6 = vcmask 1041409   ;;  %vm1856_vm7 = vcmask 1041408   ;;  %vm1926_vm8 = vcmask 1024  }
  0x21   :  { %2780 = vmatprep.subr.bf16.mxu0 %v3436_v35  ;;  %v3481_v22 = vpack.c.bf16 %v329_v16, %v322_v8  ;;  %v3515_v48 = vand.u32 127, %v18_v43  ;;  %vm1953_vm10 = vcmask 0  }
  0x24   :  { %2782 = vmatpush3.bf16.msra.mxu0 %v3436_v35 }
  0x25   :  { %2784 = vmatprep.subr.bf16.mxu0 %v3455_v2 }
  0x81   :  { %v3517_v10 = vpop.permute.xlu0 %27  ;;  %v3519_v11 = vpop.permute.xlu1 %33 }
  0x82   :  { %vm44_vm0 = vcmp.eq.s32.totalorder %v3517_v10, %v3515_v48  ;;  %vm46_vm1 = vcmp.eq.s32.totalorder %v3519_v11, %v3515_v48 }
  0x83   :  { %v1969_v3 = vsel %vm44_vm0, 1.0, %v4294_v59  ;;  %v1971_v8 = vsel %vm46_vm1, 1.0, %v4294_v59 }
  0x84   :  { %v3533_v16 = vsub.f32 %v1969_v3, %v1969_v3  ;;  %v3535_v43 = vsub.f32 %v1971_v8, %v1971_v8 }
  0x85   :  { %v3537_v19 = vpop.permute.xlu0 %30  ;;  %v3539_v17 = vpop.permute.xlu1 %36 }
  0x86   :  { %vm45_vm2 = vcmp.eq.s32.totalorder %v3537_v19, %v3515_v48  ;;  %vm47_vm3 = vcmp.eq.s32.totalorder %v3539_v17, %v3515_v48  ;;  %v4292_v60 = vand.u32 4294901760, %v3533_v16  ;;  %v4287_v57 = vand.u32 4294901760, %v3535_v43 }
  0x87   :  { %v1970_v3 = vsel %vm45_vm2, 1.0, %v4294_v59  ;;  %v1972_v8 = vsel %vm47_vm3, 1.0, %v4294_v59 }
  0x88   :  { %v3555_v44 = vsub.f32 %v1970_v3, %v1970_v3  ;;  %v3557_v34 = vsub.f32 %v1972_v8, %v1972_v8  ;;  %v162_v13 = vsub.f32 %v3533_v16, %v4292_v60  ;;  %v182_v61 = vsub.f32 %v3535_v43, %v4287_v57 }
  0x89   :  { %v3562_v12 = vpop.permute.xlu0 %39  ;;  %v3564_v62 = vpop.permute.xlu1 %42 }
  0x8a   :  { %vm48_vm4 = vcmp.eq.s32.totalorder %v3562_v12, %v3515_v48  ;;  %v163_v51 = vand.u32 4294901760, %v162_v13  ;;  %vm49_vm5 = vcmp.eq.s32.totalorder %v3564_v62, %v3515_v48  ;;  %v171_v3 = vand.u32 4294901760, %v3555_v44  ;;  %v947_v62 = vld [vmem:[%s4272_s2 + $0x68] sm:$0xff] }
  0x8b   :  { %v1973_v8 = vsel %vm48_vm4, 1.0, %v4294_v59  ;;  %v1974_v46 = vsel %vm49_vm5, 1.0, %v4294_v59  ;;  %v191_v57 = vand.u32 4294901760, %v3557_v34  ;;  %v183_v1 = vand.u32 4294901760, %v182_v61 }
  0x8c   :  { %v3583_v32 = vsub.f32 %v1973_v8, %v1973_v8  ;;  %2291 = vmatprep.mubr.f32.mxu0 %v163_v51  ;;  %v3585_v13 = vsub.f32 %v1974_v46, %v1974_v46  ;;  %v172_v31 = vsub.f32 %v3555_v44, %v171_v3 }
  0x8d   :  { %v192_v0 = vsub.f32 %v3557_v34, %v191_v57 }
  0x8e   :  { %v173_v60 = vand.u32 4294901760, %v172_v31  ;;  %v201_v58 = vand.u32 4294901760, %v3583_v32  ;;  %v211_v59 = vand.u32 4294901760, %v3585_v13 }
  0x8f   :  { %v193_v8 = vand.u32 4294901760, %v192_v0  ;;  %v3245_v0 = vmov 1.0  }
  0x90   :  { %2292 = vmatmul.mubr.f32.vlgmr.msra.gmra.mrb[0].mxu0 %v173_v60  ;;  %v202_v46 = vsub.f32 %v3583_v32, %v201_v58  ;;  %v212_v51 = vsub.f32 %v3585_v13, %v211_v59  ;;  %v3667_v60 = vld [vmem:[%s4272_s2 + $0x18] sm:$0xff] }
  0x91   :  { %2786 = vmatpush3.bf16.msra.mxu0 %v3455_v2  ;;  %2294 = vmatprep.mubr.f32.mxu0 %v183_v1  ;;  %v3653_v1 = vld [vmem:[%s4272_s2 + $0x8] sm:$0xff] }
  0x92   :  { %2788 = vmatprep.subr.bf16.mxu0 %v3371_v52  ;;  %v203_v31 = vand.u32 4294901760, %v202_v46  ;;  %v213_v61 = vand.u32 4294901760, %v212_v51  ;;  %v3699_v46 = vld [vmem:[%s4272_s2 + $0x30] sm:$0xff]  ;;  %v3704_v51 = vld [vmem:[%s4272_s2 + $0x38] sm:$0xff] }
  0x94   :  { %2295 = vmatmul.mubr.f32.gmra.mrb[2].mxu0 %v193_v8 }
  0x95   :  { %2790 = vmatpush3.bf16.msra.mxu0 %v3371_v52  ;;  %2297 = vmatprep.mubr.f32.mxu0 %v203_v31  ;;  %v3648_v52 = vld [vmem:[%s4272_s2] sm:$0xff] }
  0x96   :  { %2792 = vmatprep.subr.bf16.mxu0 %v3407_v9 }
  0x98   :  { %2298 = vmatmul.mubr.f32.gmra.mrb[4].mxu0 %v213_v61  ;;  %v976_v61 = vand.u32 4294901760, %v3699_v46 }
  0x99   :  { %2794 = vmatpush3.bf16.msra.mxu0 %v3407_v9  ;;  %2332 = vmatprep.mubr.msk.f32.mxu0 %vm44_vm0, %v3245_v0  ;;  %v3658_v9 = vld [vmem:[%s4272_s2 + $0x10] sm:$0xff] }
  0x9a   :  { %2796 = vmatprep.subr.bf16.mxu0 %v3421_v20  ;;  %v4296_v2 = vand.u32 4294901760, %v3658_v9 }
  0x9d   :  { %2798 = vmatpush3.bf16.msra.mxu0 %v3421_v20  ;;  %v958_v20 = vand.u32 4294901760, %v3648_v52 }
  0x9e   :  { %2800 = vmatprep.subr.bf16.mxu0 %v3439_v45 }
  0xa1   :  { %2802 = vmatpush3.bf16.msra.mxu0 %v3439_v45  ;;  %v4299_v45 = vand.u32 4294901760, %v3653_v1 }
  0xa2   :  { %2804 = vmatprep.subr.bf16.mxu0 %v3467_v5 }
  0xa5   :  { %2806 = vmatpush3.bf16.msra.mxu0 %v3467_v5  ;;  %v3673_v5 = vld [vmem:[%s4272_s2 + $0x20] sm:$0xff] }
  0xa6   :  { %2808 = vmatprep.subr.bf16.mxu0 %v3473_v21 }
  0xa9   :  { %2810 = vmatpush3.bf16.msra.mxu0 %v3473_v21  ;;  %v3678_v21 = vld [vmem:[%s4272_s2 + $0x28] sm:$0xff] }
  0xaa   :  { %2812 = vmatprep.subr.bf16.mxu0 %v3481_v22 }
  0xad   :  { %2814 = vmatpush3.bf16.msra.mxu0 %v3481_v22  ;;  %v4295_v22 = vand.u32 4294901760, %v3667_v60 }
  0xae   :  { %2816 = vmatprep.subr.bf16.mxu0 %v3485_v26 }
  0xaf   :  { %v3694_v8 = vpack.c.bf16 %v4295_v22, %v4296_v2  ;;  %v4302_v22 = vand.u32 4294901760, %v3704_v51  ;;  %v3727_v2 = vld [vmem:[%s4272_s2 + $0x48] sm:$0xff] }
  0xb0   :  { %2333 = vmatmul.mubr.msk.f32.vlgmr.msra.gmra.mrb[0].mxu0 %vm45_vm2, %v3245_v0 }
  0xb1   :  { %2335 = vmatprep.mubr.msk.f32.mxu0 %vm46_vm1, %v3245_v0  ;;  %2818 = vmatpush3.bf16.msra.mxu0 %v3485_v26  ;;  %v3686_v26 = vpack.c.bf16 %v4299_v45, %v958_v20  ;;  %v4300_v45 = vand.u32 4294901760, %v3727_v2 }
  0xb2   :  { %2820 = vmatprep.subr.bf16.mxu0 %v3489_v27 }
  0xb3   :  { %2944 = vmatprep.subr.bf16.mxu1 %v3686_v26 }
  0xb4   :  { %2336 = vmatmul.mubr.msk.f32.gmra.mrb[2].mxu0 %vm47_vm3, %v3245_v0  ;;  %2946 = vmatpush3.bf16.msra.mxu1 %v3686_v26 }
  0xb5   :  { %2338 = vmatprep.mubr.msk.f32.mxu0 %vm48_vm4, %v3245_v0  ;;  %2822 = vmatpush3.bf16.msra.mxu0 %v3489_v27  ;;  %v4298_v27 = vand.u32 4294901760, %v3673_v5 }
  0xb6   :  { %2824 = vmatprep.subr.bf16.mxu0 %v3493_v37  ;;  %2948 = vmatprep.subr.bf16.mxu1 %v3694_v8 }
  0xb8   :  { %2339 = vmatmul.mubr.msk.f32.gmra.mrb[4].mxu0 %vm49_vm5, %v3245_v0  ;;  %2950 = vmatpush3.bf16.msra.mxu1 %v3694_v8 }
  0xb9   :  { %2826 = vmatpush3.bf16.msra.mxu0 %v3493_v37  ;;  %2373 = vmatprep.mubr.f32.mxu0 %v3533_v16  ;;  %v4297_v37 = vand.u32 4294901760, %v3678_v21 }
  0xba   :  { %2828 = vmatprep.subr.bf16.mxu0 %v3497_v38 }
  0xbb   :  { %v3715_v31 = vpack.c.bf16 %v4297_v37, %v4298_v27  ;;  %v3737_v37 = vpack.c.bf16 %v4302_v22, %v976_v61  ;;  %v4326_v22 = vand.u32 4294901760, %v3535_v43 }
  0xbd   :  { %2830 = vmatpush3.bf16.msra.mxu0 %v3497_v38  ;;  %v3722_v38 = vld [vmem:[%s4272_s2 + $0x40] sm:$0xff]  ;;  %2952 = vmatprep.subr.bf16.mxu1 %v3715_v31 }
  0xbe   :  { %2832 = vmatprep.subr.bf16.mxu0 %v3501_v30  ;;  %v4301_v27 = vand.u32 4294901760, %v3722_v38  ;;  %2954 = vmatpush3.bf16.msra.mxu1 %v3715_v31 }
  0xbf   :  { %2956 = vmatprep.subr.bf16.mxu1 %v3737_v37 }
  0xc1   :  { %2834 = vmatpush3.bf16.msra.mxu0 %v3501_v30  ;;  %v3749_v30 = vpack.c.bf16 %v4300_v45, %v4301_v27  ;;  %v4325_v45 = vand.u32 4294901760, %v3331_v29  ;;  %v4330_v29 = vand.u32 4294901760, %v3378_v55  ;;  %v4334_v55 = vand.u32 4294901760, %v3431_v25 }
  0xc2   :  { %2836 = vmatprep.subr.bf16.mxu0 %v3505_v42  ;;  %2958 = vmatpush3.bf16.msra.mxu1 %v3737_v37  ;;  %v3907_v25 = vsub.f32 %v3648_v52, %v958_v20 }
  0xc3   :  { %2960 = vmatprep.subr.bf16.mxu1 %v3749_v30 }
  0xc4   :  { %v4318_v48 = vand.u32 4294901760, %v3907_v25 }
  0xc5   :  { %2838 = vmatpush3.bf16.msra.mxu0 %v3505_v42  ;;  %v4321_v42 = vand.u32 4294901760, %v3533_v16 }
  0xc6   :  { %2840 = vmatprep.subr.bf16.mxu0 %v3509_v53  ;;  %2962 = vmatpush3.bf16.msra.mxu1 %v3749_v30 }
  0xc9   :  { %2842 = vmatpush3.bf16.msra.mxu0 %v3509_v53  ;;  %v4322_v53 = vand.u32 4294901760, %v3366_v49  ;;  %v4327_v49 = vand.u32 4294901760, %v3351_v39  ;;  %v4332_v39 = vand.u32 4294901760, %v3405_v7  ;;  %v4338_v7 = vld [vmem:[#allocation5_spill] sm:$0xff] }
  0xca   :  { %2844 = vmatprep.subr.bf16.mxu0 %v3513_v4 }
  0xcd   :  { %2846 = vmatpush3.bf16.msra.mxu0 %v3513_v4  ;;  %v4323_v4 = vand.u32 4294901760, %v3368_v50  ;;  %v4328_v50 = vand.u32 4294901760, %v3353_v41 }
  0xce   :  { %2848 = vmatprep.subr.bf16.mxu0 %v3302_v15 }
  0xcf   :  { %v2879_v16 = vpack.c.bf16 %v4323_v4, %v4322_v53  ;;  %v2887_v53 = vpack.c.bf16 %v4328_v50, %v4327_v49 }
  0xd0   :  { %2374 = vmatmul.mubr.f32.vlgmr.msra.gmra.mrb[0].mxu0 %v3555_v44 }
  0xd1   :  { %2376 = vmatprep.mubr.f32.mxu0 %v3535_v43  ;;  %2850 = vmatpush3.bf16.msra.mxu0 %v3302_v15  ;;  %v4339_v43 = vand.u32 4294901760, %v4338_v7 }
  0xd2   :  { %2852 = vmatprep.subr.bf16.mxu0 %v3304_v18 }
  0xd4   :  { %2377 = vmatmul.mubr.f32.gmra.mrb[2].mxu0 %v3557_v34 }
  0xd5   :  { %2379 = vmatprep.mubr.f32.mxu0 %v3583_v32  ;;  %2854 = vmatpush3.bf16.msra.mxu0 %v3304_v18  ;;  %v4331_v32 = vand.u32 4294901760, %v3403_v6  ;;  %v4337_v6 = vand.u32 4294901760, %v3463_v56  ;;  %v949_v56 = vld [vmem:[%s4272_s2 + $0x78] sm:$0xff] }
  0xd6   :  { %2856 = vmatprep.subr.bf16.mxu0 %v3321_v23  ;;  %v1003_v19 = vand.u32 4294901760, %v949_v56 }
  0xd7   :  { %v2895_v41 = vpack.c.bf16 %v4332_v39, %v4331_v32 }
  0xd8   :  { %2380 = vmatmul.mubr.f32.gmra.mrb[4].mxu0 %v3585_v13  ;;  %v1102_v13 = vsub.f32 %v3907_v25, %v4318_v48 }
  0xd9   :  { %2858 = vmatpush3.bf16.msra.mxu0 %v3321_v23  ;;  %2414 = vmatprep.mubr.f32.mxu0 %v4321_v42  ;;  %v4324_v42 = vand.u32 4294901760, %v3329_v28  ;;  %v4329_v28 = vand.u32 4294901760, %v3376_v54  ;;  %v4333_v54 = vand.u32 4294901760, %v3429_v24 }
  0xda   :  { %2860 = vmatprep.subr.bf16.mxu0 %v3340_v33  ;;  %v1103_v52 = vand.u32 4294901760, %v1102_v13 }
  0xdb   :  { %v2883_v27 = vpack.c.bf16 %v4325_v45, %v4324_v42  ;;  %v2891_v44 = vpack.c.bf16 %v4330_v29, %v4329_v28  ;;  %v2899_v34 = vpack.c.bf16 %v4334_v55, %v4333_v54  ;;  %v3962_v54 = vsub.f32 %v949_v56, %v1003_v19 }
  0xdd   :  { %2862 = vmatpush3.bf16.msra.mxu0 %v3340_v33 }
  0xde   :  { %2864 = vmatprep.subr.bf16.mxu0 %v3361_v47 }
  0xe1   :  { %2866 = vmatpush3.bf16.msra.mxu0 %v3361_v47 }
  0xe2   :  { %2868 = vmatprep.subr.bf16.mxu0 %v3390_v63 }
  0xe5   :  { %2870 = vmatpush3.bf16.msra.mxu0 %v3390_v63 }
  0xe6   :  { %2872 = vmatprep.subr.bf16.mxu0 %v3413_v14 }
  0xe9   :  { %2874 = vmatpush3.bf16.msra.mxu0 %v3413_v14 }
  0xea   :  { %2876 = vmatprep.subr.bf16.mxu0 %v3436_v35 }
  0xed   :  { %2878 = vmatpush3.bf16.msra.mxu0 %v3436_v35 }
  0xee   :  { %2880 = vmatprep.subr.bf16.mxu0 %v2879_v16 }
  0xf0   :  { %2415 = vmatmul.mubr.f32.vlgmr.msra.gmra.mrb[0].mxu0 %v171_v3  ;;  %v2907_v3 = vpack.c.bf16 %v4339_v43, %v4337_v6 }
  0xf1   :  { %2417 = vmatprep.mubr.f32.mxu0 %v4326_v22  ;;  %2882 = vmatpush3.bf16.msra.mxu0 %v2879_v16 }
  0xf2   :  { %2884 = vmatprep.subr.bf16.mxu0 %v2883_v27 }
  0xf4   :  { %2418 = vmatmul.mubr.f32.gmra.mrb[2].mxu0 %v191_v57  ;;  %v4335_v57 = vand.u32 4294901760, %v3444_v36 }
  0xf5   :  { %2420 = vmatprep.mubr.f32.mxu0 %v201_v58  ;;  %2886 = vmatpush3.bf16.msra.mxu0 %v2883_v27  ;;  %v4336_v58 = vand.u32 4294901760, %v3446_v40  ;;  %v948_v40 = vld [vmem:[%s4272_s2 + $0x70] sm:$0xff] }
  0xf6   :  { %2888 = vmatprep.subr.bf16.mxu0 %v2887_v53  ;;  %v1000_v17 = vand.u32 4294901760, %v948_v40 }
  0xf8   :  { %2421 = vmatmul.mubr.f32.gmra.mrb[4].mxu0 %v211_v59  ;;  %v2903_v59 = vpack.c.bf16 %v4336_v58, %v4335_v57  ;;  %v3924_v11 = vpack.c.bf16 %v1003_v19, %v1000_v17  ;;  %v4303_v58 = vand.u32 4294901760, %v3962_v54  ;;  %v4343_v19 = vand.u32 4294901760, %v3673_v5 }
  0xf9   :  { %2890 = vmatpush3.bf16.msra.mxu0 %v2887_v53  ;;  %2455 = vmatprep.mubr.msk.f32.mxu0 %vm44_vm0, %v3245_v0 }
  0xfa   :  { %2892 = vmatprep.subr.bf16.mxu0 %v2891_v44  ;;  %v1207_v7 = vsub.f32 %v3962_v54, %v4303_v58  ;;  %v4010_v13 = vsub.f32 %v3673_v5, %v4343_v19 }
  0xfd   :  { %2894 = vmatpush3.bf16.msra.mxu0 %v2891_v44 }
  0xfe   :  { %2896 = vmatprep.subr.bf16.mxu0 %v2895_v41 }
 0x101   :  { %2898 = vmatpush3.bf16.msra.mxu0 %v2895_v41  ;;  %v3960_v41 = vsub.f32 %v948_v40, %v1000_v17 }
 0x102   :  { %2900 = vmatprep.subr.bf16.mxu0 %v2899_v34 }
 0x103   :  { %v4304_v57 = vand.u32 4294901760, %v3960_v41 }
 0x105   :  { %2902 = vmatpush3.bf16.msra.mxu0 %v2899_v34  ;;  %v1200_v6 = vsub.f32 %v3960_v41, %v4304_v57  ;;  %v4347_v57 = vand.u32 4294901760, %v3727_v2 }
 0x106   :  { %2904 = vmatprep.subr.bf16.mxu0 %v2903_v59 }
 0x109   :  { %2906 = vmatpush3.bf16.msra.mxu0 %v2903_v59 }
 0x10a   :  { %2908 = vmatprep.subr.bf16.mxu0 %v2907_v3 }
 0x10d   :  { %2910 = vmatpush3.bf16.msra.mxu0 %v2907_v3  ;;  %v1201_v3 = vand.u32 4294901760, %v1200_v6 }
 0x10e   :  { %2912 = vmatprep.subr.bf16.mxu0 %v3302_v15 }
 0x110   :  { %2456 = vmatmul.mubr.msk.f32.vlgmr.msra.gmra.mrb[0].mxu0 %vm45_vm2, %v3245_v0 }
 0x111   :  { %2458 = vmatprep.mubr.msk.f32.mxu0 %vm46_vm1, %v3245_v0  ;;  %2914 = vmatpush3.bf16.msra.mxu0 %v3302_v15  ;;  %v944_v15 = vld [vmem:[%s4272_s2 + $0x50] sm:$0xff] }
 0x112   :  { %2916 = vmatprep.subr.bf16.mxu0 %v3304_v18 }
 0x114   :  { %2459 = vmatmul.mubr.msk.f32.gmra.mrb[2].mxu0 %vm47_vm3, %v3245_v0 }
 0x115   :  { %2461 = vmatprep.mubr.msk.f32.mxu0 %vm48_vm4, %v3245_v0  ;;  %2918 = vmatpush3.bf16.msra.mxu0 %v3304_v18  ;;  %v945_v18 = vld [vmem:[%s4272_s2 + $0x58] sm:$0xff] }
 0x116   :  { %2920 = vmatprep.subr.bf16.mxu0 %v3321_v23 }
 0x118   :  { %2462 = vmatmul.mubr.msk.f32.gmra.mrb[4].mxu0 %vm49_vm5, %v3245_v0 }
 0x119   :  { %2922 = vmatpush3.bf16.msra.mxu0 %v3321_v23  ;;  %2496 = vmatprep.mubr.msk.f32.mxu0 %vm44_vm0, %v3245_v0  ;;  %v988_v23 = vand.u32 4294901760, %v944_v15 }
 0x11a   :  { %2924 = vmatprep.subr.bf16.mxu0 %v3340_v33 }
 0x11b   :  { %v3937_v45 = vsub.f32 %v944_v15, %v988_v23  ;;  %v1208_v15 = vand.u32 4294901760, %v1207_v7 }
 0x11d   :  { %2926 = vmatpush3.bf16.msra.mxu0 %v3340_v33  ;;  %v991_v33 = vand.u32 4294901760, %v945_v18  ;;  %v4308_v27 = vand.u32 4294901760, %v3937_v45 }
 0x11e   :  { %2928 = vmatprep.subr.bf16.mxu0 %v3361_v47 }
 0x11f   :  { %v3939_v22 = vsub.f32 %v945_v18, %v991_v33  ;;  %v1172_v16 = vsub.f32 %v3937_v45, %v4308_v27  ;;  %v3977_v18 = vpack.c.bf16 %v1208_v15, %v1201_v3 }
 0x121   :  { %2930 = vmatpush3.bf16.msra.mxu0 %v3361_v47  ;;  %v3892_v47 = vpack.c.bf16 %v991_v33, %v988_v23  ;;  %v4307_v4 = vand.u32 4294901760, %v3939_v22  ;;  %v1173_v53 = vand.u32 4294901760, %v1172_v16  ;;  %v3985_v33 = vpack.c.bf16 %v3939_v22, %v3937_v45 }
 0x122   :  { %2932 = vmatprep.subr.bf16.mxu0 %v3390_v63  ;;  %v4310_v16 = vand.u32 4294901760, %v4010_v13 }
 0x123   :  { %2964 = vmatprep.subr.bf16.mxu1 %v3892_v47  ;;  %v1179_v42 = vsub.f32 %v3939_v22, %v4307_v4 }
 0x124   :  { %2966 = vmatpush3.bf16.msra.mxu1 %v3892_v47 }
 0x125   :  { %2934 = vmatpush3.bf16.msra.mxu0 %v3390_v63  ;;  %v946_v63 = vld [vmem:[%s4272_s2 + $0x60] sm:$0xff]  ;;  %v1180_v28 = vand.u32 4294901760, %v1179_v42 }
 0x126   :  { %2936 = vmatprep.subr.bf16.mxu0 %v3413_v14  ;;  %v994_v12 = vand.u32 4294901760, %v946_v63 }
 0x127   :  { %v3955_v32 = vpack.c.bf16 %v1180_v28, %v1173_v53  ;;  %v4345_v28 = vand.u32 4294901760, %v3704_v51 }
 0x128   :  { %v3949_v49 = vsub.f32 %v946_v63, %v994_v12 }
 0x129   :  { %2938 = vmatpush3.bf16.msra.mxu0 %v3413_v14  ;;  %v997_v14 = vand.u32 4294901760, %v947_v62 }
 0x12a   :  { %2940 = vmatprep.subr.bf16.mxu0 %v3436_v35  ;;  %v4306_v29 = vand.u32 4294901760, %v3949_v49 }
 0x12b   :  { %v3902_v24 = vpack.c.bf16 %v997_v14, %v994_v12  ;;  %v3951_v50 = vsub.f32 %v947_v62, %v997_v14  ;;  %v3993_v62 = vpack.c.bf16 %v3962_v54, %v3960_v41  ;;  %v4341_v12 = vand.u32 4294901760, %v3658_v9 }
 0x12c   :  { %v1186_v39 = vsub.f32 %v3949_v49, %v4306_v29 }
 0x12d   :  { %2942 = vmatpush3.bf16.msra.mxu0 %v3436_v35  ;;  %v4340_v35 = vand.u32 4294901760, %v3653_v1  ;;  %2968 = vmatprep.subr.bf16.mxu1 %v3902_v24  ;;  %v4305_v44 = vand.u32 4294901760, %v3951_v50  ;;  %v3989_v63 = vpack.c.bf16 %v3951_v50, %v3949_v49  ;;  %v3998_v14 = vsub.f32 %v3658_v9, %v4341_v12 }
 0x12e   :  { %2970 = vmatpush3.bf16.msra.mxu1 %v3902_v24  ;;  %v1187_v34 = vand.u32 4294901760, %v1186_v39  ;;  %v4035_v39 = vsub.f32 %v3704_v51, %v4345_v28 }
 0x12f   :  { %v3912_v36 = vsub.f32 %v3653_v1, %v4340_v35  ;;  %2972 = vmatprep.subr.bf16.mxu1 %v3924_v11  ;;  %v1193_v55 = vsub.f32 %v3951_v50, %v4305_v44  ;;  %v4342_v35 = vand.u32 4294901760, %v3667_v60  ;;  %v4314_v56 = vand.u32 4294901760, %v3998_v14 }
 0x130   :  { %2497 = vmatmul.mubr.msk.f32.vlgmr.msra.gmra.mrb[0].mxu0 %vm45_vm2, %v3245_v0  ;;  %v4315_v19 = vand.u32 4294901760, %v4035_v39  ;;  %v4073_v44 = vsub.f32 %v3727_v2, %v4347_v57 }
 0x131   :  { %2499 = vmatprep.mubr.msk.f32.mxu0 %vm46_vm1, %v3245_v0  ;;  %v4316_v10 = vand.u32 4294901760, %v3912_v36  ;;  %v1194_v59 = vand.u32 4294901760, %v1193_v55  ;;  %v3981_v23 = vpack.c.bf16 %v3912_v36, %v3907_v25  ;;  %v4003_v40 = vsub.f32 %v3667_v60, %v4342_v35 }
 0x132   :  { %2974 = vmatpush3.bf16.msra.mxu1 %v3924_v11  ;;  %v1116_v9 = vsub.f32 %v3998_v14, %v4314_v56  ;;  %v1151_v57 = vsub.f32 %v4035_v39, %v4315_v19 }
 0x133   :  { %v3975_v43 = vpack.c.bf16 %v1194_v59, %v1187_v34  ;;  %v4312_v17 = vand.u32 4294901760, %v4003_v40 }
 0x134   :  { %2500 = vmatmul.mubr.msk.f32.gmra.mrb[2].mxu0 %vm47_vm3, %v3245_v0  ;;  %v1117_v59 = vand.u32 4294901760, %v1116_v9  ;;  %v1152_v48 = vand.u32 4294901760, %v1151_v57 }
 0x135   :  { %2502 = vmatprep.mubr.msk.f32.mxu0 %vm48_vm4, %v3245_v0  ;;  %v1123_v60 = vsub.f32 %v4003_v40, %v4312_v17 }
 0x137   :  { %v1124_v6 = vand.u32 4294901760, %v1123_v60  ;;  %v4346_v60 = vand.u32 4294901760, %v3722_v38 }
 0x138   :  { %2503 = vmatmul.mubr.msk.f32.gmra.mrb[4].mxu0 %vm49_vm5, %v3245_v0  ;;  %v1109_v0 = vsub.f32 %v3912_v36, %v4316_v10 }
 0x139   :  { %v2979_v58 = vpack.c.bf16 %v1124_v6, %v1117_v59 }
 0x13a   :  { %v1110_v1 = vand.u32 4294901760, %v1109_v0  ;;  %v4344_v0 = vand.u32 4294901760, %v3678_v21 }
 0x13c   :  { %v3934_v20 = vpack.c.bf16 %v1110_v1, %v1103_v52  ;;  %v4015_v52 = vsub.f32 %v3678_v21, %v4344_v0  ;;  %v4030_v21 = vsub.f32 %v3699_v46, %v976_v61  ;;  %v1130_v46 = vsub.f32 %v4010_v13, %v4310_v16 }
 0x13e   :  { %2976 = vmatprep.subr.bf16.mxu1 %v3934_v20  ;;  %v4309_v42 = vand.u32 4294901760, %v4015_v52  ;;  %v4313_v35 = vand.u32 4294901760, %v4030_v21 }
 0x140   :  { %v1137_v51 = vsub.f32 %v4015_v52, %v4309_v42  ;;  %v1144_v2 = vsub.f32 %v4030_v21, %v4313_v35  ;;  %v1164_v35 = vand.u32 4294901760, %v4073_v44 }
 0x203   :  { %v2498_v1 = vpop.f32.mrb[0].mxu0 }
 0x204   :  { %v4025_v5 = vand.u32 4294901760, %v2498_v1  ;;  %v900_v53 = vpop.f32.mrb[1].mxu0 }
 0x205   :  { %v4037_v55 = vand.u32 4294901760, %v900_v53 }
 0x206   :  { %v4040_v34 = vsub.f32 %v2498_v1, %v4025_v5  ;;  %v4062_v1 = vsub.f32 %v3722_v38, %v4346_v60  ;;  %v1138_v60 = vand.u32 4294901760, %v1137_v51 }
 0x207   :  { %v4043_v7 = vsub.f32 %v900_v53, %v4037_v55  ;;  %v2501_v3 = vpop.f32.mrb[2].mxu0 }
 0x208   :  { %v4311_v61 = vand.u32 4294901760, %v4040_v34  ;;  %v4052_v15 = vand.u32 4294901760, %v2501_v3  ;;  %v912_v12 = vpop.f32.mrb[3].mxu0 }
 0x209   :  { %v4056_v0 = vand.u32 4294901760, %v912_v12  ;;  %v4319_v9 = vand.u32 4294901760, %v4043_v7 }
 0x20a   :  { %v4065_v53 = vsub.f32 %v2501_v3, %v4052_v15  ;;  %v1051_v28 = vsub.f32 %v4040_v34, %v4311_v61  ;;  %v1131_v3 = vand.u32 4294901760, %v1130_v46  ;;  %v1157_v46 = vand.u32 4294901760, %v4062_v1 }
 0x20b   :  { %v4076_v29 = vsub.f32 %v912_v12, %v4056_v0  ;;  %v2504_v4 = vpop.f32.mrb[4].mxu0  ;;  %v1041_v38 = vsub.f32 %v4043_v7, %v4319_v9 }
 0x20c   :  { %v4317_v27 = vand.u32 4294901760, %v4065_v53  ;;  %v4082_v42 = vand.u32 4294901760, %v2504_v4  ;;  %v924_v59 = vpop.f32.mrb[5].mxu0  ;;  %v1052_v61 = vand.u32 4294901760, %v1051_v28 }
 0x20d   :  { %v1060_v6 = vand.u32 4294901760, %v4076_v29  ;;  %v4091_v12 = vand.u32 4294901760, %v924_v59  ;;  %v1042_v16 = vand.u32 4294901760, %v1041_v38 }
 0x20e   :  { %v4095_v51 = vsub.f32 %v2504_v4, %v4082_v42  ;;  %v1071_v17 = vsub.f32 %v4065_v53, %v4317_v27  ;;  %v2983_v4 = vpack.c.bf16 %v1138_v60, %v1131_v3  ;;  %v1145_v27 = vand.u32 4294901760, %v1144_v2 }
 0x20f   :  { %v4102_v56 = vsub.f32 %v924_v59, %v4091_v12  ;;  %2537 = vmatprep.mubr.f32.mxu1 %v1042_v16  ;;  %v1061_v38 = vsub.f32 %v4076_v29, %v1060_v6  ;;  %v1158_v59 = vsub.f32 %v4062_v1, %v1157_v46 }
 0x210   :  { %v1090_v19 = vand.u32 4294901760, %v4095_v51  ;;  %2538 = vmatmul.mubr.f32.vlgmr.msra.gmra.mrb[0].mxu1 %v1052_v61  ;;  %v1072_v9 = vand.u32 4294901760, %v1071_v17  ;;  %v1165_v61 = vsub.f32 %v4073_v44, %v1164_v35  ;;  %v2987_v60 = vpack.c.bf16 %v1152_v48, %v1145_v27 }
 0x211   :  { %v1080_v28 = vand.u32 4294901760, %v4102_v56  ;;  %2978 = vmatpush3.bf16.msra.mxu1 %v3934_v20  ;;  %v1062_v10 = vand.u32 4294901760, %v1061_v38  ;;  %v1159_v2 = vand.u32 4294901760, %v1158_v59  ;;  %v3011_v48 = vpack.c.bf16 %v4003_v40, %v3998_v14 }
 0x212   :  { %2980 = vmatprep.subr.bf16.mxu1 %v2979_v58  ;;  %v1091_v16 = vsub.f32 %v4095_v51, %v1090_v19  ;;  %v1166_v57 = vand.u32 4294901760, %v1165_v61  ;;  %v3019_v27 = vpack.c.bf16 %v4035_v39, %v4030_v21 }
 0x213   :  { %2540 = vmatprep.mubr.f32.mxu1 %v1062_v10  ;;  %v1081_v20 = vsub.f32 %v4102_v56, %v1080_v28  ;;  %v3015_v10 = vpack.c.bf16 %v4015_v52, %v4010_v13 }
 0x214   :  { %2541 = vmatmul.mubr.f32.gmra.mrb[2].mxu1 %v1072_v9  ;;  %v1092_v3 = vand.u32 4294901760, %v1091_v16  ;;  %v2991_v38 = vpack.c.bf16 %v1166_v57, %v1159_v2 }
 0x215   :  { %2982 = vmatpush3.bf16.msra.mxu1 %v2979_v58  ;;  %v1082_v17 = vand.u32 4294901760, %v1081_v20  ;;  %v4348_v58 = vand.u32 4294901760, %v4043_v7 }
 0x216   :  { %2984 = vmatprep.subr.bf16.mxu1 %v2983_v4 }
 0x217   :  { %2543 = vmatprep.mubr.f32.mxu1 %v1082_v17 }
 0x218   :  { %2544 = vmatmul.mubr.f32.gmra.mrb[4].mxu1 %v1092_v3 }
 0x219   :  { %2986 = vmatpush3.bf16.msra.mxu1 %v2983_v4  ;;  %2578 = vmatprep.mubr.f32.mxu1 %v4037_v55  ;;  %v4356_v4 = vand.u32 4294901760, %v4065_v53 }
 0x21a   :  { %2988 = vmatprep.subr.bf16.mxu1 %v2987_v60 }
 0x21d   :  { %2990 = vmatpush3.bf16.msra.mxu1 %v2987_v60 }
 0x21e   :  { %2992 = vmatprep.subr.bf16.mxu1 %v2991_v38 }
 0x221   :  { %2994 = vmatpush3.bf16.msra.mxu1 %v2991_v38 }
 0x222   :  { %2996 = vmatprep.subr.bf16.mxu1 %v3955_v32 }
 0x225   :  { %2998 = vmatpush3.bf16.msra.mxu1 %v3955_v32  ;;  %v3023_v32 = vpack.c.bf16 %v4073_v44, %v4062_v1  ;;  %v4363_v1 = vand.u32 4294901760, %v3960_v41  ;;  %v4364_v44 = vand.u32 4294901760, %v3962_v54 }
 0x226   :  { %3000 = vmatprep.subr.bf16.mxu1 %v3975_v43 }
 0x229   :  { %3002 = vmatpush3.bf16.msra.mxu1 %v3975_v43  ;;  %v4349_v43 = vand.u32 4294901760, %v3907_v25  ;;  %v4354_v25 = vand.u32 4294901760, %v4010_v13  ;;  %v4359_v13 = vand.u32 4294901760, %v3937_v45 }
 0x22a   :  { %3004 = vmatprep.subr.bf16.mxu1 %v3977_v18 }
 0x22d   :  { %3006 = vmatpush3.bf16.msra.mxu1 %v3977_v18  ;;  %v4350_v18 = vand.u32 4294901760, %v3912_v36  ;;  %v4355_v36 = vand.u32 4294901760, %v4015_v52  ;;  %v4360_v52 = vand.u32 4294901760, %v3939_v22 }
 0x22e   :  { %3008 = vmatprep.subr.bf16.mxu1 %v3981_v23 }
 0x22f   :  { %v3079_v9 = vpack.c.bf16 %v4355_v36, %v4354_v25 }
 0x230   :  { %2579 = vmatmul.mubr.f32.vlgmr.msra.gmra.mrb[0].mxu1 %v4025_v5 }
 0x231   :  { %2581 = vmatprep.mubr.f32.mxu1 %v4056_v0  ;;  %3010 = vmatpush3.bf16.msra.mxu1 %v3981_v23  ;;  %v3071_v23 = vpack.c.bf16 %v4350_v18, %v4349_v43 }
 0x232   :  { %3012 = vmatprep.subr.bf16.mxu1 %v3011_v48 }
 0x234   :  { %2582 = vmatmul.mubr.f32.gmra.mrb[2].mxu1 %v4052_v15 }
 0x235   :  { %2584 = vmatprep.mubr.f32.mxu1 %v4091_v12  ;;  %3014 = vmatpush3.bf16.msra.mxu1 %v3011_v48 }
 0x236   :  { %3016 = vmatprep.subr.bf16.mxu1 %v3015_v10 }
 0x238   :  { %2585 = vmatmul.mubr.f32.gmra.mrb[4].mxu1 %v4082_v42 }
 0x239   :  { %3018 = vmatpush3.bf16.msra.mxu1 %v3015_v10  ;;  %2619 = vmatprep.mubr.f32.mxu1 %v4043_v7  ;;  %v4353_v7 = vand.u32 4294901760, %v4040_v34 }
 0x23a   :  { %3020 = vmatprep.subr.bf16.mxu1 %v3019_v27 }
 0x23d   :  { %3022 = vmatpush3.bf16.msra.mxu1 %v3019_v27 }
 0x23e   :  { %3024 = vmatprep.subr.bf16.mxu1 %v3023_v32 }
 0x241   :  { %3026 = vmatpush3.bf16.msra.mxu1 %v3023_v32 }
 0x242   :  { %3028 = vmatprep.subr.bf16.mxu1 %v3985_v33 }
 0x245   :  { %3030 = vmatpush3.bf16.msra.mxu1 %v3985_v33  ;;  %v4351_v33 = vand.u32 4294901760, %v3998_v14  ;;  %v4357_v14 = vand.u32 4294901760, %v4030_v21  ;;  %v3091_v21 = vpack.c.bf16 %v4360_v52, %v4359_v13 }
 0x246   :  { %3032 = vmatprep.subr.bf16.mxu1 %v3989_v63 }
 0x249   :  { %3034 = vmatpush3.bf16.msra.mxu1 %v3989_v63  ;;  %v4352_v63 = vand.u32 4294901760, %v4003_v40 }
 0x24a   :  { %3036 = vmatprep.subr.bf16.mxu1 %v3993_v62 }
 0x24d   :  { %3038 = vmatpush3.bf16.msra.mxu1 %v3993_v62  ;;  %v3075_v62 = vpack.c.bf16 %v4352_v63, %v4351_v33 }
 0x24e   :  { %3040 = vmatprep.subr.bf16.mxu1 %v3686_v26 }
 0x250   :  { %2620 = vmatmul.mubr.f32.vlgmr.msra.gmra.mrb[0].mxu1 %v4040_v34  ;;  %v4362_v34 = vand.u32 4294901760, %v3951_v50 }
 0x251   :  { %2622 = vmatprep.mubr.f32.mxu1 %v4076_v29  ;;  %3042 = vmatpush3.bf16.msra.mxu1 %v3686_v26  ;;  %v4358_v29 = vand.u32 4294901760, %v4035_v39  ;;  %v4361_v39 = vand.u32 4294901760, %v3949_v49 }
 0x252   :  { %3044 = vmatprep.subr.bf16.mxu1 %v3694_v8 }
 0x253   :  { %v3083_v40 = vpack.c.bf16 %v4358_v29, %v4357_v14 }
 0x254   :  { %2623 = vmatmul.mubr.f32.gmra.mrb[2].mxu1 %v4065_v53 }
 0x255   :  { %2625 = vmatprep.mubr.f32.mxu1 %v4102_v56  ;;  %3046 = vmatpush3.bf16.msra.mxu1 %v3694_v8  ;;  %v3087_v56 = vpack.c.bf16 %v1164_v35, %v1157_v46  ;;  %v3099_v35 = vpack.c.bf16 %v4364_v44, %v4363_v1 }
 0x256   :  { %3048 = vmatprep.subr.bf16.mxu1 %v3715_v31 }
 0x258   :  { %2626 = vmatmul.mubr.f32.gmra.mrb[4].mxu1 %v4095_v51 }
 0x259   :  { %3050 = vmatpush3.bf16.msra.mxu1 %v3715_v31  ;;  %2660 = vmatprep.mubr.f32.mxu1 %v4348_v58 }
 0x25a   :  { %3052 = vmatprep.subr.bf16.mxu1 %v3737_v37 }
 0x25d   :  { %3054 = vmatpush3.bf16.msra.mxu1 %v3737_v37 }
 0x25e   :  { %3056 = vmatprep.subr.bf16.mxu1 %v3749_v30 }
 0x261   :  { %3058 = vmatpush3.bf16.msra.mxu1 %v3749_v30 }
 0x262   :  { %3060 = vmatprep.subr.bf16.mxu1 %v3892_v47 }
 0x265   :  { %3062 = vmatpush3.bf16.msra.mxu1 %v3892_v47 }
 0x266   :  { %3064 = vmatprep.subr.bf16.mxu1 %v3902_v24 }
 0x269   :  { %3066 = vmatpush3.bf16.msra.mxu1 %v3902_v24 }
 0x26a   :  { %3068 = vmatprep.subr.bf16.mxu1 %v3924_v11 }
 0x26d   :  { %3070 = vmatpush3.bf16.msra.mxu1 %v3924_v11 }
 0x26e   :  { %3072 = vmatprep.subr.bf16.mxu1 %v3071_v23 }
 0x270   :  { %2661 = vmatmul.mubr.f32.vlgmr.msra.gmra.mrb[0].mxu1 %v4353_v7 }
 0x271   :  { %2663 = vmatprep.mubr.f32.mxu1 %v1060_v6  ;;  %3074 = vmatpush3.bf16.msra.mxu1 %v3071_v23 }
 0x272   :  { %3076 = vmatprep.subr.bf16.mxu1 %v3075_v62 }
 0x274   :  { %2664 = vmatmul.mubr.f32.gmra.mrb[2].mxu1 %v4356_v4 }
 0x275   :  { %2666 = vmatprep.mubr.f32.mxu1 %v1080_v28  ;;  %3078 = vmatpush3.bf16.msra.mxu1 %v3075_v62 }
 0x276   :  { %3080 = vmatprep.subr.bf16.mxu1 %v3079_v9 }
 0x278   :  { %2667 = vmatmul.mubr.f32.gmra.mrb[4].mxu1 %v1090_v19  ;;  %v3095_v19 = vpack.c.bf16 %v4362_v34, %v4361_v39 }
 0x279   :  { %3082 = vmatpush3.bf16.msra.mxu1 %v3079_v9  ;;  %2701 = vmatprep.mubr.f32.mxu1 %v4037_v55 }
 0x27a   :  { %3084 = vmatprep.subr.bf16.mxu1 %v3083_v40 }
 0x27d   :  { %3086 = vmatpush3.bf16.msra.mxu1 %v3083_v40 }
 0x27e   :  { %3088 = vmatprep.subr.bf16.mxu1 %v3087_v56 }
 0x281   :  { %3090 = vmatpush3.bf16.msra.mxu1 %v3087_v56 }
 0x282   :  { %3092 = vmatprep.subr.bf16.mxu1 %v3091_v21 }
 0x285   :  { %3094 = vmatpush3.bf16.msra.mxu1 %v3091_v21 }
 0x286   :  { %3096 = vmatprep.subr.bf16.mxu1 %v3095_v19 }
 0x289   :  { %3098 = vmatpush3.bf16.msra.mxu1 %v3095_v19 }
 0x28a   :  { %3100 = vmatprep.subr.bf16.mxu1 %v3099_v35 }
 0x28d   :  { %3102 = vmatpush3.bf16.msra.mxu1 %v3099_v35 }
 0x28e   :  { %3104 = vmatprep.subr.bf16.mxu1 %v3686_v26 }
 0x290   :  { %2702 = vmatmul.mubr.f32.vlgmr.msra.gmra.mrb[0].mxu1 %v4025_v5 }
 0x291   :  { %2704 = vmatprep.mubr.f32.mxu1 %v4056_v0  ;;  %3106 = vmatpush3.bf16.msra.mxu1 %v3686_v26  ;;  %v1993_v26 = vld [vmem:[%s4273_s3] ss:$0 sm:$0xff] }
 0x292   :  { %3108 = vmatprep.subr.bf16.mxu1 %v3694_v8 }
 0x294   :  { %2705 = vmatmul.mubr.f32.gmra.mrb[2].mxu1 %v4052_v15 }
 0x295   :  { %2707 = vmatprep.mubr.f32.mxu1 %v4091_v12  ;;  %3110 = vmatpush3.bf16.msra.mxu1 %v3694_v8 }
 0x296   :  { %3112 = vmatprep.subr.bf16.mxu1 %v3715_v31 }
 0x298   :  { %2708 = vmatmul.mubr.f32.gmra.mrb[4].mxu1 %v4082_v42 }
 0x299   :  { %3114 = vmatpush3.bf16.msra.mxu1 %v3715_v31  ;;  %2742 = vmatprep.mubr.f32.mxu1 %v4037_v55 }
 0x29a   :  { %3116 = vmatprep.subr.bf16.mxu1 %v3737_v37 }
 0x29d   :  { %3118 = vmatpush3.bf16.msra.mxu1 %v3737_v37 }
 0x29e   :  { %3120 = vmatprep.subr.bf16.mxu1 %v3749_v30 }
 0x2a1   :  { %3122 = vmatpush3.bf16.msra.mxu1 %v3749_v30 }
 0x2a2   :  { %3124 = vmatprep.subr.bf16.mxu1 %v3892_v47 }
 0x2a5   :  { %3126 = vmatpush3.bf16.msra.mxu1 %v3892_v47 }
 0x2a6   :  { %3128 = vmatprep.subr.bf16.mxu1 %v3902_v24 }
 0x2a9   :  { %3130 = vmatpush3.bf16.msra.mxu1 %v3902_v24 }
 0x2aa   :  { %3132 = vmatprep.subr.bf16.mxu1 %v3924_v11 }
 0x2ad   :  { %3134 = vmatpush3.bf16.msra.mxu1 %v3924_v11 }
 0x2b0   :  { %2743 = vmatmul.mubr.f32.vlgmr.msra.gmra.mrb[0].mxu1 %v4025_v5 }
 0x2b1   :  { %2745 = vmatprep.mubr.f32.mxu1 %v4056_v0 }
 0x2b4   :  { %2746 = vmatmul.mubr.f32.gmra.mrb[2].mxu1 %v4052_v15 }
 0x2b5   :  { %2748 = vmatprep.mubr.f32.mxu1 %v4091_v12 }
 0x2b8   :  { %2749 = vmatmul.mubr.f32.gmra.mrb[4].mxu1 %v4082_v42 }
 0x383   :  { %v2744_v37 = vpop.f32.mrb[0].mxu1 }
 0x384   :  { %v3135_v8 = vadd.f32 %v2744_v37, %v1993_v26  ;;  %v1779_v31 = vpop.f32.mrb[1].mxu1 }
 0x385   :  { %v3136_v30 = vadd.f32 %v1993_v26, %v1779_v31 }
 0x386   :  { %v1819_v47 = vrot.slane %v3135_v8, 4 }
 0x387   :  { %v1813_v24 = vrot.slane %v3136_v30, 4  ;;  %v2747_v11 = vpop.f32.mrb[2].mxu1 }
 0x388   :  { %v1820_v45 = vmax.f32 %v3135_v8, %v1819_v47  ;;  %v3137_v22 = vadd.f32 %v2747_v11, %v1993_v26  ;;  %v1791_v49 = vpop.f32.mrb[3].mxu1 }
 0x389   :  { %v1814_v50 = vmax.f32 %v3136_v30, %v1813_v24  ;;  %v3138_v41 = vadd.f32 %v1993_v26, %v1791_v49 }
 0x38a   :  { %v1821_v54 = vrot.slane %v1820_v45, 2  ;;  %v1831_v5 = vrot.slane %v3137_v22, 4 }
 0x38b   :  { %v1815_v55 = vrot.slane %v1814_v50, 2  ;;  %v1825_v42 = vrot.slane %v3138_v41, 4  ;;  %v2750_v15 = vpop.f32.mrb[4].mxu1 }
 0x38c   :  { %v1822_v0 = vmax.f32 %v1820_v45, %v1821_v54  ;;  %v1832_v53 = vmax.f32 %v3137_v22, %v1831_v5  ;;  %v3139_v6 = vadd.f32 %v2750_v15, %v1993_v26  ;;  %v1803_v12 = vpop.f32.mrb[5].mxu1 }
 0x38d   :  { %v1816_v46 = vmax.f32 %v1814_v50, %v1815_v55  ;;  %v1826_v51 = vmax.f32 %v3138_v41, %v1825_v42  ;;  %v3140_v28 = vadd.f32 %v1993_v26, %v1803_v12 }
 0x38e   :  { %v1823_v16 = vrot.slane %v1822_v0, 1  ;;  %v1833_v59 = vrot.slane %v1832_v53, 2  ;;  %v1843_v61 = vrot.slane %v3139_v6, 4 }
 0x38f   :  { %v1817_v20 = vrot.slane %v1816_v46, 1  ;;  %v1827_v17 = vrot.slane %v1826_v51, 2  ;;  %v1837_v3 = vrot.slane %v3140_v28, 4 }
 0x390   :  { %v1824_v60 = vmax.f32 %v1822_v0, %v1823_v16  ;;  %v1834_v2 = vmax.f32 %v1832_v53, %v1833_v59  ;;  %v1844_v57 = vmax.f32 %v3139_v6, %v1843_v61 }
 0x391   :  { %v1818_v38 = vmax.f32 %v1816_v46, %v1817_v20  ;;  %v1828_v48 = vmax.f32 %v1826_v51, %v1827_v17  ;;  %v1838_v10 = vmax.f32 %v3140_v28, %v1837_v3  ;;  %v4365_v17 = vmov 0.0  }
 0x392   :  { %v1835_v27 = vrot.slane %v1834_v2, 1  ;;  %v1845_v32 = vrot.slane %v1844_v57, 2  ;;  %v1850_v58 = vmul.f32 %v1824_v60, %v1824_v60 }
 0x393   :  { %v1829_v43 = vrot.slane %v1828_v48, 1  ;;  %v1839_v18 = vrot.slane %v1838_v10, 2  ;;  %v1849_v23 = vmul.f32 %v1818_v38, %v1818_v38 }
 0x394   :  { %v1836_v33 = vmax.f32 %v1834_v2, %v1835_v27  ;;  %v1846_v63 = vmax.f32 %v1844_v57, %v1845_v32 }
 0x395   :  { %v1830_v62 = vmax.f32 %v1828_v48, %v1829_v43  ;;  %v1840_v7 = vmax.f32 %v1838_v10, %v1839_v18  ;;  %v1854_v25 = vsel %vm1853_vm6, %v1850_v58, %v1849_v23 }
 0x396   :  { %v1847_v36 = vrot.slane %v1846_v63, 1  ;;  %v1857_v9 = vsel %vm1856_vm7, %v1854_v25, 0.0  ;;  %v1869_v4 = vmul.f32 %v1836_v33, %v1836_v33 }
 0x397   :  { %v1841_v14 = vrot.slane %v1840_v7, 1  ;;  %1858 = vadd.xlane.f32.xlu0 %v1857_v9  ;;  %v1868_v29 = vmul.f32 %v1830_v62, %v1830_v62 }
 0x398   :  { %v1848_v40 = vmax.f32 %v1846_v63, %v1847_v36 }
 0x399   :  { %v1842_v56 = vmax.f32 %v1840_v7, %v1841_v14  ;;  %v1872_v13 = vsel %vm1853_vm6, %v1869_v4, %v1868_v29 }
 0x39a   :  { %v1874_v52 = vsel %vm1856_vm7, %v1872_v13, 0.0  ;;  %v1886_v21 = vmul.f32 %v1848_v40, %v1848_v40 }
 0x39b   :  { %1875 = vadd.xlane.f32.xlu1 %v1874_v52  ;;  %v1885_v39 = vmul.f32 %v1842_v56, %v1842_v56 }
 0x39d   :  { %v1889_v34 = vsel %vm1853_vm6, %v1886_v21, %v1885_v39 }
 0x39e   :  { %v1891_v19 = vsel %vm1856_vm7, %v1889_v34, 0.0 }
 0x39f   :  { %1892 = vadd.xlane.f32.xlu0 %v1891_v19 }
 0x424   :  { %v1859_v1 = vpop.xlane.xlu0 %1858 }
 0x425   :  { %v1860_v44 = vmax.f32 %v1859_v1, 1e-24 }
 0x427   :  { %3211 = vrsqrt.f32 %v1860_v44 }
 0x428   :  { %v1876_v35 = vpop.xlane.xlu1 %1875 }
 0x429   :  { %v1877_v26 = vmax.f32 %v1876_v35, 1e-24 }
 0x42b   :  { %3213 = vrsqrt.f32 %v1877_v26 }
 0x42c   :  { %v1893_v37 = vpop.xlane.xlu0 %1892 }
 0x42d   :  { %v1894_v8 = vmax.f32 %v1893_v37, 1e-24 }
 0x42f   :  { %3215 = vrsqrt.f32 %v1894_v8 }
 0x431   :  { %v3212_v31 = vpop.eup %3211 }
 0x432   :  { %v1863_v30 = vrot.slane %v3212_v31, 1  ;;  %v1866_v50 = vmul.f32 %v3212_v31, %v1818_v38 }
 0x434   :  { %v1867_v11 = vmul.f32 %v1863_v30, %v1824_v60 }
 0x435   :  { %v3214_v47 = vpop.eup %3213 }
 0x436   :  { %v1880_v24 = vrot.slane %v3214_v47, 1  ;;  %v1883_v45 = vmul.f32 %v3214_v47, %v1830_v62 }
 0x438   :  { %v1884_v22 = vmul.f32 %v1880_v24, %v1836_v33  ;;  %v1902_v5 = vmul.f32 %v1883_v45, %v1866_v50 }
 0x439   :  { %v3216_v49 = vpop.eup %3215 }
 0x43a   :  { %v1903_v41 = vmul.f32 %v1884_v22, %v1867_v11  ;;  %v1897_v54 = vrot.slane %v3216_v49, 1  ;;  %v1900_v42 = vmul.f32 %v3216_v49, %v1842_v56 }
 0x43c   :  { %v1906_v55 = vrot.slane %v1903_v41, 7  ;;  %v1901_v15 = vmul.f32 %v1897_v54, %v1848_v40  ;;  %v1912_v12 = vmul.f32 %v1900_v42, %v1866_v50 }
 0x43e   :  { %v1907_v0 = vsel %vm1853_vm6, %v1906_v55, %v1902_v5  ;;  %v1913_v53 = vmul.f32 %v1901_v15, %v1867_v11 }
 0x43f   :  { %v1909_v6 = vsel %vm1856_vm7, %v1907_v0, 0.0 }
 0x440   :  { %1910 = vadd.xlane.f32.xlu0 %v1909_v6  ;;  %v1916_v46 = vrot.slane %v1913_v53, 7 }
 0x442   :  { %v1917_v51 = vsel %vm1853_vm6, %v1916_v46, %v1912_v12 }
 0x443   :  { %v1919_v28 = vsel %vm1856_vm7, %v1917_v51, 0.0 }
 0x444   :  { %1920 = vadd.xlane.f32.xlu1 %v1919_v28 }
 0x4cd   :  { %v1911_v16 = vpop.xlane.xlu0 %1910 }
 0x4d1   :  { %v1921_v59 = vpop.xlane.xlu1 %1920 }
 0x4d2   :  { %v1922_v61 = vsub.f32 %v1921_v59, %v1911_v16 }
 0x4d4   :  { %v1923_v20 = vadd.f32 0.1, %v1922_v61 }
 0x4d6   :  { %vm1924_vm9 = vcmp.gt.f32.partialorder %v1923_v20, 0.0 }
 0x4d7   :  { %v1994_v3 = vsel %vm1924_vm9, 1.0, %v4365_v17  ;;  %v1925_v60 = vsel %vm1924_vm9, %v1923_v20, 0.0 }
 0x4d8   :  { %v1940_v2 = vsel %vm1926_vm8, %v1994_v3, 0.0  ;;  %v1927_v57 = vsel %vm1926_vm8, %v1925_v60, 0.0 }
 0x4d9   :  { %1941 = vadd.xlane.f32.xlu1 %v1940_v2  ;;  %1928 = vadd.xlane.f32.xlu0 %v1927_v57 }
 0x566   :  { %v1942_v38 = vpop.xlane.xlu1 %1941  ;;  %v1929_v48 = vpop.xlane.xlu0 %1928 }
 0x567   :  { %v1943_v10 = vrot.slane %v1942_v38, 4  ;;  %v1930_v27 = vrot.slane %v1929_v48, 4 }
 0x569   :  { %v1944_v32 = vadd.f32 %v1943_v10, %v1942_v38  ;;  %v1931_v58 = vadd.f32 %v1930_v27, %v1929_v48 }
 0x56b   :  { %v1945_v43 = vrot.slane %v1944_v32, 2  ;;  %v1932_v18 = vrot.slane %v1931_v58, 2 }
 0x56d   :  { %v1946_v23 = vadd.f32 %v1945_v43, %v1944_v32  ;;  %v1933_v33 = vadd.f32 %v1932_v18, %v1931_v58 }
 0x56f   :  { %v1934_v63 = vrot.slane %v1933_v33, 1  ;;  %v1947_v62 = vrot.slane %v1946_v23, 1 }
 0x571   :  { %v1935_v7 = vadd.f32 %v1934_v63, %v1933_v33  ;;  %v1948_v25 = vadd.f32 %v1947_v62, %v1946_v23 }
 0x573   :  { %3201 = vpush %v1935_v7 }
 0x574   :  { %3203 = vpush %v1948_v25 }
 0x5a4   :  { %s3202_s3 = spop %3201 }
 0x5a5   :  { %s3204_s10 = spop %3203  ;;  %v1937_v4 = vstv %s3202_s3 }
 0x5a6   :  { %v1950_v36 = vstv %s3204_s10 }
 0x5a7   :  { %3217 = vrcp.f32 %v1950_v36 }
 0x5b1   :  { %v3218_v9 = vpop.eup %3217 }
 0x5b2   :  { %v1952_v14 = vmul.f32 %v3218_v9, %v1937_v4 }
 0x5b4   :  { %1954 = vst.msk [vmem:[#allocation2] sm:$0x1] %vm1953_vm10, %v1952_v14 }
 0x5b5   :  { %3230 = shalt.err (!%p3227_p4)
}
 0x5b6   :  { %s3231_s17 = scalar_lea.hbm %s4274_s4, 16 }
 0x5b7   :  { %p3232_p5 = scmp.ne.s32.totalorder %s4274_s4, %s3231_s17  ;;  %p3235_p6 = scmp.lt.u32.totalorder %s3231_s17, %s4274_s4 }
 0x5b9   :  { %p3237_p7 = pnand %p3235_p6, %p3232_p5 }
 0x5bb   :  { %3240 = shalt.err (!%p3237_p7)
}
 0x5bc   :  { %1964 = dma.vmem_to_hbm [thread:$0]  %s1962_s12, 16, %s4274_s4, [#allocation3]  }
 0x5bd   :  { %3241 = dma.done.wait [#allocation3], 16  }
 0x5be   :  { %3242 = vsyncadd [#allocation3], 4294967280 }
 0x5bf   :  { %1968 = vsyncpa [#allocation3], 1 }

</bundles_post_ra>
